<compile_context>
chip_gen: v7x
topology: tpu7x:2x2x1
jax: 0.10.0
libtpu: 0.0.40
codegen_flags: <defaults>
</compile_context>

<pallas_src>
import math

import jax
import jax.numpy as jnp
from jax.experimental import pallas as pl
from jax.experimental.pallas import tpu as pltpu


def _mq_kernel(a2_ref, x_ref, o_ref):
    # a2_ref: (TR, 1) f32 per-row a^2 (factor/agnostic_a folded in).
    # x_ref / o_ref: (TR, TM) in x's dtype.
    xv = x_ref[...]
    if xv.dtype != jnp.float32:          # static trace-time check; no-op for f32 x
        xv = xv.astype(jnp.float32)
    o_ref[...] = jax.lax.rsqrt(1.0 + a2_ref[...] * (xv * xv)).astype(o_ref.dtype)


def _choose_fold(B, N):
    """Pick G | N so rows = B*G >= 64 while cols = N // G stays a multiple of 128."""
    if B >= 64 or N % 128 != 0:
        return 1
    m128 = N // 128
    best = 1
    for g in range(1, m128 + 1):
        if m128 % g != 0:
            continue
        best = g
        if B * g >= 64:
            break
    return best


def _round_up(v, m):
    return -(-v // m) * m


def multi_quadratic(x, codes, weight, agnostic_a, factor):
    """x: (B, C, H, W) or (B, C, L); codes: (B, code); weight: (1, code)."""
    orig_shape = x.shape
    B = x.shape[0]
    N = int(math.prod(x.shape[1:]))
    itemsize = jnp.dtype(x.dtype).itemsize

    # --- tiny per-batch linear hoisted out of the kernel; pre-square a ---
    a = (jnp.asarray(agnostic_a, dtype=jnp.float32).reshape(-1)[0]
         + jnp.float32(factor)
         * jnp.dot(codes.astype(jnp.float32),
                   weight.astype(jnp.float32).T))           # (B, 1)
    a2 = (a * a).reshape(B, 1)

    # --- fold trailing dims into rows when B is small (sublane density) ---
    G = _choose_fold(B, N)
    R, M = B * G, N // G
    x2 = x.reshape(R, M)                                    # free for contiguous layouts
    a2r = jnp.broadcast_to(a2, (B, G)).reshape(R, 1) if G > 1 else a2

    # --- tile selection: ~2 MiB per tile ---
    sub = 8 * max(1, 4 // itemsize)            # 8 (f32), 16 (bf16), 32 (int8/fp8)
    elems_per_tile = (2 * 1024 * 1024) // itemsize

    # lane tile: full row if it fits, else the largest multiple-of-128 divisor
    # of M <= 8192 (exact division keeps all stores unmasked).
    if M <= 8192:
        TM = M
    else:
        TM = 8192
        if M % 128 == 0:
            for d in range(8192 // 128, 0, -1):
                if (M // 128) % d == 0:
                    TM = d * 128
                    break

    # row tile: fill up to ~2 MiB, multiple of `sub` (or the full extent).
    tr_target = max(sub, elems_per_tile // max(TM, 1))
    TR = R if R <= tr_target else (tr_target // sub) * sub

    grid_r, grid_m = pl.cdiv(R, TR), pl.cdiv(M, TM)

    # guarantee >= 2 grid steps so both of v7x's TensorCores get work
    if grid_r * grid_m < 2:
        if M >= 256:
            TM = _round_up((M + 1) // 2, 128)
            grid_m = pl.cdiv(M, TM)
        elif R >= 2 * sub:
            TR = _round_up((R + 1) // 2, sub)
            grid_r = pl.cdiv(R, TR)

    cost = pl.CostEstimate(
        flops=3 * B * N,
        transcendentals=B * N,
        bytes_accessed=2 * B * N * itemsize + R * 4,
    )

    out = pl.pallas_call(
        _mq_kernel,
        out_shape=jax.ShapeDtypeStruct((R, M), x.dtype),
        grid=(grid_r, grid_m),
        in_specs=[
            pl.BlockSpec((TR, 1), lambda i, j: (i, 0)),    # per-row a^2
            pl.BlockSpec((TR, TM), lambda i, j: (i, j)),   # x tile
        ],
        out_specs=pl.BlockSpec((TR, TM), lambda i, j: (i, j)),
        compiler_params=pltpu.CompilerParams(
            dimension_semantics=("parallel", "parallel")),
        cost_estimate=cost,
    )(a2r, x2)

    return out.reshape(orig_shape)


if __name__ == "__main__":
    key = jax.random.PRNGKey(0)
    B, C, H, W = 2, 4, 16, 16
    code = 8
    factor = 0.5

    k1, k2, k3 = jax.random.split(key, 3)
    x = jax.random.normal(k1, (B, C, H, W), dtype=jnp.float32)
    codes = jax.random.normal(k2, (B, code), dtype=jnp.float32)

    # deterministic parameter init (matching __init__ / reset_parameters shapes)
    bound = 1.0 / math.sqrt(code)
    weight = jax.random.uniform(k3, (1, code), minval=-bound, maxval=bound,
                                dtype=jnp.float32)
    agnostic_a = jnp.float32(1.0)

    # 4D path (folds trailing dims: rows = 16, cols = 128)
    out = multi_quadratic(x, codes, weight, agnostic_a, factor)
    out = jax.block_until_ready(out)

    a_ref = agnostic_a + factor * (codes @ weight.T)     # (B, 1)
    ref4 = 1.0 / jnp.sqrt(1.0 + (a_ref[:, :, None, None] * x) ** 2)
    assert out.shape == x.shape and out.dtype == x.dtype
    assert jnp.allclose(out, ref4, atol=1e-5, rtol=1e-5), "4D mismatch vs reference"

    # 3D path (exercises the no-fold / full-block fallback)
    x3 = jax.random.normal(k1, (B, C, 8), dtype=jnp.float32)
    out3 = jax.block_until_ready(multi_quadratic(x3, codes, weight, agnostic_a, factor))
    ref3 = 1.0 / jnp.sqrt(1.0 + (a_ref[:, :, None] * x3) ** 2)
    assert jnp.allclose(out3, ref3, atol=1e-5, rtol=1e-5), "3D mismatch vs reference"

    print("KERNEL_OK")
</pallas_src>

<mosaic_0001>
module attributes {stable_mosaic.version = 11 : i64} {
  func.func @_mq_kernel(%arg0: i32, %arg1: i32, %arg2: memref<8x1xf32, #tpu.memory_space<vmem>>, %arg3: memref<8x128xf32, #tpu.memory_space<vmem>>, %arg4: memref<8x128xf32, #tpu.memory_space<vmem>>) attributes {dimension_semantics = [#tpu.dimension_semantics<parallel>, #tpu.dimension_semantics<parallel>], iteration_bounds = array<i64: 2, 1>, scalar_prefetch = 0 : i64, scratch_operands = 0 : i64, tpu.core_type = #tpu.core_type<tc>, window_params = [{transform_indices = @transform_0, window_bounds = array<i64: 8, 1>}, {transform_indices = @transform_1, window_bounds = array<i64: 8, 128>}, {transform_indices = @transform_2, window_bounds = array<i64: 8, 128>}]} {
    %c0 = arith.constant 0 : index
    %c0_0 = arith.constant 0 : index
    %0 = vector.load %arg3[%c0, %c0_0] : memref<8x128xf32, #tpu.memory_space<vmem>>, vector<8x128xf32>
    %c0_1 = arith.constant 0 : index
    %c0_2 = arith.constant 0 : index
    %1 = vector.load %arg2[%c0_1, %c0_2] : memref<8x1xf32, #tpu.memory_space<vmem>>, vector<8x1xf32>
    %2 = arith.mulf %0, %0 : vector<8x128xf32>
    %3 = vector.broadcast %1 : vector<8x1xf32> to vector<8x128xf32>
    %4 = arith.mulf %3, %2 : vector<8x128xf32>
    %cst = arith.constant 1.000000e+00 : f32
    %5 = vector.broadcast %cst : f32 to vector<8x128xf32>
    %6 = arith.addf %5, %4 : vector<8x128xf32>
    %7 = math.rsqrt %6 : vector<8x128xf32>
    %c0_3 = arith.constant 0 : index
    %c0_4 = arith.constant 0 : index
    %8 = vector.load %arg4[%c0_3, %c0_4] : memref<8x128xf32, #tpu.memory_space<vmem>>, vector<8x128xf32>
    tpu.vector_store %arg4[%c0_3, %c0_4], %7 {strides = array<i32>} : memref<8x128xf32, #tpu.memory_space<vmem>>, vector<8x128xf32>,
    return
  }
  func.func @transform_0(%arg0: i32, %arg1: i32) -> (i32, i32) {
    %c0_i32 = arith.constant 0 : i32
    %c0_i32_0 = arith.constant 0 : i32
    return %arg0, %c0_i32 : i32, i32
  }
  func.func @transform_1(%arg0: i32, %arg1: i32) -> (i32, i32) {
    %c0_i32 = arith.constant 0 : i32
    return %arg0, %arg1 : i32, i32
  }
  func.func @transform_2(%arg0: i32, %arg1: i32) -> (i32, i32) {
    %c0_i32 = arith.constant 0 : i32
    return %arg0, %arg1 : i32, i32
  }
}

</mosaic_0001>

<bundles_post_ra>
// kernel: tpu_custom_call.1
= control target key start
LH: loop header
LB: loop body
LE: loop exit
PB: predicated region body
PF: predicated region fallthrough
CT: control target
= control target key end

     0   :  { %7 = vsyncpa [#allocation3], 0  ;;  %s574_s0 = inlined_call_operand.vmem [shape: f32[16,1], index: 0, kind: input, shape index: {}]   ;;  %s575_s1 = inlined_call_operand.vmem [shape: f32[16,128], index: 1, kind: input, shape index: {}]   ;;  %s576_s2 = inlined_call_operand.hbm [shape: f32[16,128], index: 2, kind: output, shape index: {}]  }
   0x1   :  { %9 = vsyncpa [#allocation3 + $0x1], 0  ;;  %s459_s9 = smov 0   ;;  %s461_s10 = smov 0  }
   0x2   :  { %s463_s11 = smov 0   ;;  %s465_s12 = smov 0  }
   0x3   :  { %s467_s13 = smov 0   ;;  %s469_s14 = smov 0  }
   0x4 LB: > { %s291_s15 = sadd.s32 4294967295, %s440_s14   ;;  %s292_s16 = sadd.s32 4294967294, %s440_s14   ;;  %s440_s14 = sphi %s469_s14, %s15_s14   ;;  %s436_s13 = sphi %s467_s13, %s583_s13   ;;  %s432_s12 = sphi %s465_s12, %s582_s12   ;;  %s428_s11 = sphi %s463_s11, %s581_s11   ;;  %s424_s10 = sphi %s461_s10, %s580_s10   ;;  %s420_s9 = sphi %s459_s9, %s579_s9  }
   0x5   : > { %s27_s17 = sadd.s32 1, %s436_s13  ;;  %s90_s18 = sadd.s32 1, %s428_s11 }
   0x6   : > { %p29_p0 = scmp.ge.s32.totalorder %s27_s17, 2  ;;  %p100_p1 = scmp.ne.s32.totalorder %s428_s11, %s424_s10 }
   0x7   : > { %p101_p2 = scmp.eq.s32.totalorder %s291_s15, 1  ;;  %p106_p3 = scmp.ne.s32.totalorder %s424_s10, %s420_s9 }
   0x8   : > { %s585_s17 = smov (%p29_p0, %s27_s17), 0  ;;  %p107_p5 = scmp.eq.s32.totalorder %s292_s16, 1 }
   0x9   : > { %p499_p4 = por %p101_p2, %p100_p1  ;;  %s85_s20 = ssub.s32 %s436_s13, %s585_s17 }
   0xa   : > { %p295_p6 = scmp.ge.s32.totalorder %s440_s14, 1  ;;  %p88_p7 = scmp.eq.s32.totalorder %s85_s20, 0 }
   0xb   : > { %p506_p8 = por %p107_p5, %p106_p3  ;;  %p142_p9 = scmp.lt.s32.totalorder %s440_s14, 3 }
   0xc   : > { %s512_s22 = scalar_select %p88_p7, %s428_s11, %s90_s18  }
   0xd   : > { %p143_p10 = pnand %p295_p6, %p142_p9 }
   0xe   : > { %p170_p11 = scmp.lt.s32.totalorder (!%p143_p10), %s432_s12, 1  ;;  %v442_v0 = vmov (!%p143_p10), 0   ;;  %s167_s3 = sand.u32 (!%p143_p10), 1, %s424_s10  }
   0xf   : > { %146 = sbr.rel (%p143_p10) target bundleno = 184 (0xb8), region = 28  ;;  %359 = vset.pattern.permute.xlu0 (!%p143_p10), %v442_v0  ;;  %s296_s4 = sshll.u32 (!%p143_p10), %s167_s3, 3 }
  0x10   : > { %s300_s5 = sshll.u32 (!%p143_p10), %s432_s12, 7  ;;  %s169_s6 = scalar_lea.vmem (!%p143_p10), [#allocation2], %s296_s4 }
  0x11   : > { %s208_s7 = sshll.u32 (!%p143_p10), %s169_s6, 4  ;;  %s527_s16 = scalar_lea.hbm (!%p143_p10), %s576_s2, %s300_s5  ;;  %s529_s7 = int_to_ptr.vmem [resolvable:$true] %s208_s7 }
  0x12   : > { %s194_s18 = scalar_lea.sflag (!%p143_p10), [#allocation3], %s167_s3  ;;  %s362_s20 = scalar_lea.vmem (!%p143_p10), %s529_s7, 128 }
  0x13   : > { %p363_p12 = scmp.ne.s32.totalorder (!%p143_p10), %s529_s7, %s362_s20 }
  0x15   : > { %p364_p13 = pnand (!%p143_p10), %p363_p12, %p499_p4 }
  0x16   : > { %s171_s23 = scalar_select %p170_p11, %s432_s12, 1 }
  0x17   : > { %p365_p0 = pneg %p364_p13  ;;  %s443_s12 = smov [#allocation2]  }
  0x18   : > { %s297_s24 = sshll.u32 %s171_s23, 3  ;;  %s366_s23 = sshll.u32 %s443_s12, 4  ;;  %s367_s23 = int_to_ptr.vmem [resolvable:$false] %s366_s23 }
  0x19   : > { %s173_s27 = scalar_lea.vmem %s574_s0, %s297_s24  ;;  %s180_s30 = scalar_lea.vmem %s575_s1, %s297_s24 }
  0x1a   : > { %v182_v1 = vld [vmem:[%s173_s27] sm:$0xff]  ;;  %s368_s24 = scalar_lea.vmem %s367_s23, 256  ;;  %p369_p1 = scmp.lt.s32.totalorder %s529_s7, %s367_s23 }
  0x1b   : > { %186 = vperm.xlu0 %359, %v182_v1   ;;  %v181_v2 = vld [vmem:[%s180_s30] sm:$0xff]  ;;  %p370_p2 = scmp.lt.s32.totalorder %s368_s24, %s362_s20 }
  0x1c   : > { %v183_v3 = vmul.f32 %v181_v2, %v181_v2 }
  0x1d   : > { %p371_p3 = por %p370_p2, %p369_p1 }
  0x1f   : > { %p372_p5 = pnand %p371_p3, %p365_p0 }
  0x9a   : > { %v187_v4 = vpop.permute.xlu0 %186 }
  0x9b   : > { %v189_v5 = vmul.f32 %v187_v4, %v183_v3 }
  0x9d   : > { %v190_v6 = vadd.f32 1.0, %v189_v5 }
  0x9f   : > { %360 = vrsqrt.f32 %v190_v6 }
  0xa9   : > { %v361_v7 = vpop.eup %360 }
  0xaa   : > { %192 = vst [vmem:[%s169_s6] sm:$0xff] %v361_v7 }
  0xab   : > { %375 = shalt.err (!%p372_p5)
}
  0xac   : > { %s376_s25 = scalar_lea.hbm %s527_s16, 128  ;;  %s380_s28 = scalar_lea.hbm %s576_s2, 256 }
  0xad   : > { %p377_p6 = scmp.ne.s32.totalorder %s527_s16, %s376_s25  ;;  %p381_p10 = scmp.lt.u32.totalorder %s527_s16, %s576_s2 }
  0xae   : > { %p382_p11 = scmp.lt.u32.totalorder %s380_s28, %s376_s25  ;;  %p384_p13 = scmp.lt.u32.totalorder %s376_s25, %s527_s16 }
  0xaf   : > { %p378_p7 = pnand %p377_p6, %p499_p4 }
  0xb0   : > { %p383_p12 = por %p382_p11, %p381_p10 }
  0xb1   : > { %p379_p9 = pneg %p378_p7 }
  0xb2   : > { %p385_p0 = por %p384_p13, %p383_p12 }
  0xb4   : > { %p386_p1 = pnand %p385_p0, %p379_p9 }
  0xb6   : > { %389 = shalt.err (!%p386_p1)
}
  0xb7   : > { %303 = dma.vmem_to_hbm [thread:$0]  (%p499_p4), %s529_s7, 128, %s527_s16, %s194_s18  }
  0xb8 PF: > { %p309_p2 = scmp.ge.s32.totalorder %s440_s14, 2  ;;  %s220_s3 = sand.u32 1, %s420_s9  }
  0xb9   : > { %s221_s4 = scalar_lea.sflag [#allocation3], %s220_s3 }
  0xba   : > { %p306_p3 = pnand %p309_p2, %p506_p8 }
  0xbc   : > { %415 = dma.done.wait (!%p306_p3), %s221_s4, 128  }
  0xbd   : > { %417 = vsyncadd (!%p306_p3), %s221_s4, 4294967168  ;;  %s15_s14 = sadd.s32 1, %s440_s14   ;;  %s579_s9 = smov %s424_s10 }
  0xbe   : > { %p12_p5 = scmp.ge.s32.totalorder %s15_s14, 4   ;;  %s580_s10 = smov %s428_s11 }
  0xbf   : > { %s581_s11 = smov %s512_s22  ;;  %s582_s12 = smov %s436_s13 }
  0xc0   : > { %s583_s13 = smov %s585_s17  ;;  %14 = sbr.rel (!%p12_p5) target bundleno = 4 (0x4), region = 66 }
  0xc7   :  { %226 = vsyncpa [#allocation3], 1 }
  0xc8   :  { %228 = vsyncpa [#allocation3 + $0x1], 1 }

</bundles_post_ra>
